<compile_context>
chip_gen: v7x
topology: tpu7x:2x2x1
jax: 0.10.0
libtpu: 0.0.40
codegen_flags: <defaults>
</compile_context>

<pallas_src>
import functools

import jax
import jax.numpy as jnp
from jax.experimental import pallas as pl
from jax.experimental.pallas import tpu as pltpu


def _round_up(x, m):
    return (x + m - 1) // m * m


def _hme_d_kernel(x6_ref, xf_ref, w1_ref, w2_ref, b_ref, out_ref, pred_ref,
                  *, h3p, v):
    """One batch tile.

    x6_ref : (TB, K1p)       bf16   [vid_att_a | vid_att_m | smq | 0-pad]
    xf_ref : (TB, Hp)        bf16   [feature_vqac | 0-pad]
    w1_ref : (K1p, H3p)      bf16   block-diag(Wa^T, Wm^T, Ws^T), 0-padded
    w2_ref : (H3p + Hp, Vp)  bf16   rows [0:3H] = W2^T[:3H], rows [H3p:H3p+H] = W2^T[3H:4H]
    b_ref  : (8, L)          f32    row 0 = [ba|bm|bs|0], row 1 = [b2|0]
    out_ref: (TB, Vp)        f32
    pred_ref:(TB, 128)       i32    argmax broadcast across lanes (lane-dense store)
    """
    # Fused branch layer: one MXU pass instead of three tiny ones.
    e = jnp.tanh(
        jnp.dot(x6_ref[...], w1_ref[...], preferred_element_type=jnp.float32)
        + b_ref[0:1, :h3p])

    vp = out_ref.shape[1]
    # Final Linear over the virtual concat [ea|em|es|feature_vqac]:
    # two 128-aligned K-chunks of the same W2 slab (mathematically identical).
    out = (jnp.dot(e.astype(jnp.bfloat16), w2_ref[:h3p, :],
                   preferred_element_type=jnp.float32)
           + jnp.dot(xf_ref[...], w2_ref[h3p:, :],
                     preferred_element_type=jnp.float32)
           + b_ref[1:2, :vp])
    out_ref[...] = out

    # argmax over real columns only (first maximum, torch.max semantics).
    col = jax.lax.broadcasted_iota(jnp.int32, out.shape, 1)
    valid = col < v
    masked = jnp.where(valid, out, jnp.float32(-3.4e38))      # pad cols never win
    maxv = jnp.max(masked, axis=1, keepdims=True)             # keep max in f32
    cand = jnp.where((masked == maxv) & valid, col, jnp.int32(vp))
    pred = jnp.min(cand, axis=1, keepdims=True)
    pred_ref[...] = jnp.broadcast_to(pred, pred_ref.shape).astype(jnp.int32)


def _prepare_params(params, hidden_size, answer_vocab_size):
    """Pad / transpose / pack the torch-layout weights ONCE."""
    H, V = hidden_size, answer_vocab_size
    assert params["wa"].shape == (H, 2 * H)
    assert params["wm"].shape == (H, 2 * H)
    assert params["ws"].shape == (H, 2 * H)
    assert params["w2"].shape == (V, 4 * H)

    H3p = _round_up(3 * H, 128)       # padded width of the fused branch output
    Hp = _round_up(H, 128)            # padded width of feature_vqac
    K1p = _round_up(6 * H, 128)       # padded K of the fused branch matmul
    Vp = _round_up(V, 128)            # padded vocab (lane-dense logits)
    Lmax = max(H3p, Vp)

    # Block-diagonal fused branch weight (zeros elsewhere keep the math exact).
    w1 = jnp.zeros((K1p, H3p), jnp.float32)
    w1 = w1.at[0 * 2 * H:1 * 2 * H, 0 * H:1 * H].set(params["wa"].T)
    w1 = w1.at[1 * 2 * H:2 * 2 * H, 1 * H:2 * H].set(params["wm"].T)
    w1 = w1.at[2 * 2 * H:3 * 2 * H, 2 * H:3 * H].set(params["ws"].T)

    # Second layer weight split at the 128-aligned boundary H3p.
    w2t = params["w2"].T                                   # (4H, V)
    w2 = jnp.zeros((H3p + Hp, Vp), jnp.float32)
    w2 = w2.at[0:3 * H, 0:V].set(w2t[0:3 * H, :])
    w2 = w2.at[H3p:H3p + H, 0:V].set(w2t[3 * H:4 * H, :])

    # Both biases packed into one lane-dense f32 slab (row 0 = branch, row 1 = out).
    bias = jnp.zeros((8, Lmax), jnp.float32)
    bias = bias.at[0, 0 * H:1 * H].set(params["ba"])
    bias = bias.at[0, 1 * H:2 * H].set(params["bm"])
    bias = bias.at[0, 2 * H:3 * H].set(params["bs"])
    bias = bias.at[1, 0:V].set(params["b2"])

    return dict(w1=w1.astype(jnp.bfloat16), w2=w2.astype(jnp.bfloat16),
                bias=bias, H3p=H3p, Hp=Hp, K1p=K1p, Vp=Vp)


def build_hme_d_forward(params, hidden_size, answer_vocab_size):
    """Returns a jitted forward(vid_att_a, vid_att_m, smq, feature_vqac)."""
    H, V = hidden_size, answer_vocab_size
    prep = _prepare_params(params, H, V)
    w1, w2, bias = prep["w1"], prep["w2"], prep["bias"]
    H3p, Hp, K1p, Vp = prep["H3p"], prep["Hp"], prep["K1p"], prep["Vp"]
    Lmax = bias.shape[1]

    kernel = functools.partial(_hme_d_kernel, h3p=H3p, v=V)

    @jax.jit
    def forward(vid_att_a, vid_att_m, smq, feature_vqac):
        B = vid_att_a.shape[0]
        assert vid_att_a.shape == (B, 2 * H)
        assert vid_att_m.shape == (B, 2 * H)
        assert smq.shape == (B, 2 * H)
        assert feature_vqac.shape == (B, H)

        TB = min(128, _round_up(B, 8))      # batch tile (>= f32 sublane)
        Bp = _round_up(B, TB)
        nb = Bp // TB

        # Layout plumbing (outside the kernel): pack + pad + cast to bf16.
        x6 = jnp.concatenate([vid_att_a, vid_att_m, smq], axis=1)       # (B, 6H)
        x6 = jnp.pad(x6, ((0, Bp - B), (0, K1p - 6 * H))).astype(jnp.bfloat16)
        xf = jnp.pad(feature_vqac,
                     ((0, Bp - B), (0, Hp - H))).astype(jnp.bfloat16)

        # Explicit VMEM budget with headroom (v7x: 64 MiB phys / 32 MiB scoped).
        weight_bytes = w1.size * 2 + w2.size * 2 + bias.size * 4
        act_bytes = 2 * TB * (K1p + Hp) * 2           # double-buffered inputs
        out_bytes = 2 * TB * (Vp + 128) * 4           # double-buffered outputs
        vmem_limit = int(min(max(4 * (weight_bytes + act_bytes + out_bytes),
                                 8 << 20), 48 << 20))

        out_p, pred_p = pl.pallas_call(
            kernel,
            grid=(nb,),
            in_specs=[
                pl.BlockSpec((TB, K1p), lambda i: (i, 0)),        # x6  (tiled over batch)
                pl.BlockSpec((TB, Hp), lambda i: (i, 0)),         # xf
                pl.BlockSpec((K1p, H3p), lambda i: (0, 0)),       # w1  (VMEM-resident)
                pl.BlockSpec((H3p + Hp, Vp), lambda i: (0, 0)),   # w2  (VMEM-resident)
                pl.BlockSpec((8, Lmax), lambda i: (0, 0)),        # biases
            ],
            out_specs=(
                pl.BlockSpec((TB, Vp), lambda i: (i, 0)),
                pl.BlockSpec((TB, 128), lambda i: (i, 0)),
            ),
            out_shape=(
                jax.ShapeDtypeStruct((Bp, Vp), jnp.float32),
                jax.ShapeDtypeStruct((Bp, 128), jnp.int32),
            ),
            compiler_params=pltpu.CompilerParams(
                dimension_semantics=("parallel",),
                vmem_limit_bytes=vmem_limit,
            ),
        )(x6, xf, w1, w2, bias)

        return out_p[:B, :V], pred_p[:B, 0]

    return forward


def init_params(key, hidden_size, answer_vocab_size):
    ks = jax.random.split(key, 8)
    H, V = hidden_size, answer_vocab_size

    def lin(kw, kb, out_f, in_f):
        bound = 1.0 / jnp.sqrt(in_f)
        w = jax.random.uniform(kw, (out_f, in_f), jnp.float32, -bound, bound)
        b = jax.random.uniform(kb, (out_f,), jnp.float32, -bound, bound)
        return w, b

    wa, ba = lin(ks[0], ks[1], H, 2 * H)
    wm, bm = lin(ks[2], ks[3], H, 2 * H)
    ws, bs = lin(ks[4], ks[5], H, 2 * H)
    w2, b2 = lin(ks[6], ks[7], V, 4 * H)
    return dict(wa=wa, ba=ba, wm=wm, bm=bm, ws=ws, bs=bs, w2=w2, b2=b2)


def reference_forward(vid_att_a, vid_att_m, smq, feature_vqac, p):
    ea = jnp.tanh(vid_att_a @ p["wa"].T + p["ba"])
    em = jnp.tanh(vid_att_m @ p["wm"].T + p["bm"])
    es = jnp.tanh(smq @ p["ws"].T + p["bs"])
    feat = jnp.concatenate([ea, em, es, feature_vqac], axis=1)
    out = feat @ p["w2"].T + p["b2"]
    return out, jnp.argmax(out, axis=1).astype(jnp.int32)


if __name__ == "__main__":
    B = 2            # batch
    H = 32           # hidden_size
    V = 10           # answer_vocab_size

    key = jax.random.PRNGKey(0)
    k_in, k_p = jax.random.split(key)
    k1, k2, k3, k4 = jax.random.split(k_in, 4)

    vid_att_a = jax.random.normal(k1, (B, 2 * H), jnp.float32)
    vid_att_m = jax.random.normal(k2, (B, 2 * H), jnp.float32)
    smq = jax.random.normal(k3, (B, 2 * H), jnp.float32)
    feature_vqac = jax.random.normal(k4, (B, H), jnp.float32)

    params = init_params(k_p, H, V)
    forward = build_hme_d_forward(params, H, V)

    outputs, predictions = forward(vid_att_a, vid_att_m, smq, feature_vqac)
    jax.block_until_ready((outputs, predictions))

    ref_out, ref_pred = reference_forward(vid_att_a, vid_att_m, smq,
                                          feature_vqac, params)

    assert outputs.shape == (B, V) and predictions.shape == (B,)
    # bf16 matmuls with f32 accumulation -> loose tolerance vs the f32 reference.
    assert jnp.allclose(outputs, ref_out, atol=5e-2, rtol=5e-2)
    # In-kernel argmax must match (first-max) argmax of the kernel's own logits.
    assert jnp.array_equal(predictions,
                           jnp.argmax(outputs, axis=1).astype(predictions.dtype))
    # If the reference top-2 gap is comfortably above bf16 noise, predictions
    # must also match the f32 reference exactly.
    top2 = jnp.sort(ref_out, axis=1)[:, -2:]
    if bool(jnp.all((top2[:, 1] - top2[:, 0]) > 0.1)):
        assert jnp.array_equal(predictions, ref_pred)

    print("KERNEL_OK")
</pallas_src>

<mosaic_0001>
module attributes {stable_mosaic.version = 11 : i64} {
  func.func @_hme_d_kernel(%arg0: i32, %arg1: memref<8x256xbf16, #tpu.memory_space<vmem>>, %arg2: memref<8x128xbf16, #tpu.memory_space<vmem>>, %arg3: memref<256x128xbf16, #tpu.memory_space<vmem>>, %arg4: memref<256x128xbf16, #tpu.memory_space<vmem>>, %arg5: memref<8x128xf32, #tpu.memory_space<vmem>>, %arg6: memref<8x128xf32, #tpu.memory_space<vmem>>, %arg7: memref<8x128xi32, #tpu.memory_space<vmem>>) attributes {dimension_semantics = [#tpu.dimension_semantics<parallel>], iteration_bounds = array<i64: 1>, scalar_prefetch = 0 : i64, scratch_operands = 0 : i64, tpu.core_type = #tpu.core_type<tc>, window_params = [{transform_indices = @transform_0, window_bounds = array<i64: 8, 256>}, {transform_indices = @transform_1, window_bounds = array<i64: 8, 128>}, {pipeline_mode = #tpu.pipeline_mode<synchronous>, transform_indices = @transform_2, window_bounds = array<i64: 256, 128>}, {pipeline_mode = #tpu.pipeline_mode<synchronous>, transform_indices = @transform_3, window_bounds = array<i64: 256, 128>}, {pipeline_mode = #tpu.pipeline_mode<synchronous>, transform_indices = @transform_4, window_bounds = array<i64: 8, 128>}, {transform_indices = @transform_5, window_bounds = array<i64: 8, 128>}, {transform_indices = @transform_6, window_bounds = array<i64: 8, 128>}]} {
    %c0 = arith.constant 0 : index
    %c0_0 = arith.constant 0 : index
    %0 = vector.load %arg1[%c0, %c0_0] : memref<8x256xbf16, #tpu.memory_space<vmem>>, vector<8x256xbf16>
    %c0_1 = arith.constant 0 : index
    %c0_2 = arith.constant 0 : index
    %1 = vector.load %arg3[%c0_1, %c0_2] : memref<256x128xbf16, #tpu.memory_space<vmem>>, vector<256x128xbf16>
    %cst = arith.constant dense<0.000000e+00> : vector<8x128xf32>
    %2 = tpu.matmul %0, %1, %cst {dimension_numbers = #tpu.dot_dimension_numbers<[1], [0], [0], [1], [0, 0, 1, 1], [], []>} : vector<8x256xbf16>, vector<256x128xbf16>, vector<8x128xf32> -> vector<8x128xf32>
    %c0_3 = arith.constant 0 : index
    %c0_4 = arith.constant 0 : index
    %3 = vector.load %arg5[%c0_3, %c0_4] : memref<8x128xf32, #tpu.memory_space<vmem>>, vector<1x128xf32>
    %4 = vector.broadcast %3 : vector<1x128xf32> to vector<8x128xf32>
    %5 = arith.addf %2, %4 : vector<8x128xf32>
    %6 = math.tanh %5 : vector<8x128xf32>
    %7 = arith.truncf %6 : vector<8x128xf32> to vector<8x128xbf16>
    %c0_5 = arith.constant 0 : index
    %c0_6 = arith.constant 0 : index
    %8 = vector.load %arg4[%c0_5, %c0_6] : memref<256x128xbf16, #tpu.memory_space<vmem>>, vector<128x128xbf16>
    %cst_7 = arith.constant dense<0.000000e+00> : vector<8x128xf32>
    %9 = tpu.matmul %7, %8, %cst_7 {dimension_numbers = #tpu.dot_dimension_numbers<[1], [0], [0], [1], [0, 0, 1, 1], [], []>} : vector<8x128xbf16>, vector<128x128xbf16>, vector<8x128xf32> -> vector<8x128xf32>
    %c0_8 = arith.constant 0 : index
    %c0_9 = arith.constant 0 : index
    %10 = vector.load %arg2[%c0_8, %c0_9] : memref<8x128xbf16, #tpu.memory_space<vmem>>, vector<8x128xbf16>
    %c128 = arith.constant 128 : index
    %c0_10 = arith.constant 0 : index
    %11 = vector.load %arg4[%c128, %c0_10] : memref<256x128xbf16, #tpu.memory_space<vmem>>, vector<128x128xbf16>
    %cst_11 = arith.constant dense<0.000000e+00> : vector<8x128xf32>
    %12 = tpu.matmul %10, %11, %cst_11 {dimension_numbers = #tpu.dot_dimension_numbers<[1], [0], [0], [1], [0, 0, 1, 1], [], []>} : vector<8x128xbf16>, vector<128x128xbf16>, vector<8x128xf32> -> vector<8x128xf32>
    %13 = arith.addf %9, %12 : vector<8x128xf32>
    %c1 = arith.constant 1 : index
    %c0_12 = arith.constant 0 : index
    %14 = vector.load %arg5[%c1, %c0_12] : memref<8x128xf32, #tpu.memory_space<vmem>>, vector<1x128xf32>
    %15 = vector.broadcast %14 : vector<1x128xf32> to vector<8x128xf32>
    %16 = arith.addf %13, %15 : vector<8x128xf32>
    %c0_13 = arith.constant 0 : index
    %c0_14 = arith.constant 0 : index
    %17 = vector.load %arg6[%c0_13, %c0_14] : memref<8x128xf32, #tpu.memory_space<vmem>>, vector<8x128xf32>
    tpu.vector_store %arg6[%c0_13, %c0_14], %16 {strides = array<i32>} : memref<8x128xf32, #tpu.memory_space<vmem>>, vector<8x128xf32>,
    %18 = tpu.iota {dimensions = array<i32: 1>} : vector<8x128xi32>
    %c10_i32 = arith.constant 10 : i32
    %19 = vector.broadcast %c10_i32 : i32 to vector<8x128xi32>
    %20 = arith.cmpi slt, %18, %19 : vector<8x128xi32>
    %cst_15 = arith.constant -3.400000e+38 : f32
    %21 = vector.broadcast %cst_15 : f32 to vector<8x128xf32>
    %22 = arith.select %20, %16, %21 : vector<8x128xi1>, vector<8x128xf32>
    %cst_16 = arith.constant dense<0xFF800000> : vector<8xf32>
    %23 = vector.multi_reduction <maximumf>, %22, %cst_16 [1] : vector<8x128xf32> to vector<8xf32>
    %24 = vector.shape_cast %23 : vector<8xf32> to vector<8x1xf32>
    %25 = vector.broadcast %24 : vector<8x1xf32> to vector<8x128xf32>
    %26 = arith.cmpf oeq, %22, %25 : vector<8x128xf32>
    %27 = arith.andi %26, %20 : vector<8x128xi1>
    %c128_i32 = arith.constant 128 : i32
    %28 = vector.broadcast %c128_i32 : i32 to vector<8x128xi32>
    %29 = arith.select %27, %18, %28 : vector<8x128xi1>, vector<8x128xi32>
    %cst_17 = arith.constant dense<2147483647> : vector<8xi32>
    %30 = vector.multi_reduction <minsi>, %29, %cst_17 [1] : vector<8x128xi32> to vector<8xi32>
    %31 = vector.shape_cast %30 : vector<8xi32> to vector<8x1xi32>
    %32 = vector.shape_cast %31 : vector<8x1xi32> to vector<8x1xi32>
    %33 = vector.broadcast %32 : vector<8x1xi32> to vector<8x128xi32>
    %c0_18 = arith.constant 0 : index
    %c0_19 = arith.constant 0 : index
    %34 = vector.load %arg7[%c0_18, %c0_19] : memref<8x128xi32, #tpu.memory_space<vmem>>, vector<8x128xi32>
    tpu.vector_store %arg7[%c0_18, %c0_19], %33 {strides = array<i32>} : memref<8x128xi32, #tpu.memory_space<vmem>>, vector<8x128xi32>,
    return
  }
  func.func @transform_0(%arg0: i32) -> (i32, i32) {
    %c0_i32 = arith.constant 0 : i32
    %c0_i32_0 = arith.constant 0 : i32
    return %arg0, %c0_i32 : i32, i32
  }
  func.func @transform_1(%arg0: i32) -> (i32, i32) {
    %c0_i32 = arith.constant 0 : i32
    %c0_i32_0 = arith.constant 0 : i32
    return %arg0, %c0_i32 : i32, i32
  }
  func.func @transform_2(%arg0: i32) -> (i32, i32) {
    %c0_i32 = arith.constant 0 : i32
    %c0_i32_0 = arith.constant 0 : i32
    %c0_i32_1 = arith.constant 0 : i32
    return %c0_i32, %c0_i32_0 : i32, i32
  }
  func.func @transform_3(%arg0: i32) -> (i32, i32) {
    %c0_i32 = arith.constant 0 : i32
    %c0_i32_0 = arith.constant 0 : i32
    %c0_i32_1 = arith.constant 0 : i32
    return %c0_i32, %c0_i32_0 : i32, i32
  }
  func.func @transform_4(%arg0: i32) -> (i32, i32) {
    %c0_i32 = arith.constant 0 : i32
    %c0_i32_0 = arith.constant 0 : i32
    %c0_i32_1 = arith.constant 0 : i32
    return %c0_i32, %c0_i32_0 : i32, i32
  }
  func.func @transform_5(%arg0: i32) -> (i32, i32) {
    %c0_i32 = arith.constant 0 : i32
    %c0_i32_0 = arith.constant 0 : i32
    return %arg0, %c0_i32 : i32, i32
  }
  func.func @transform_6(%arg0: i32) -> (i32, i32) {
    %c0_i32 = arith.constant 0 : i32
    %c0_i32_0 = arith.constant 0 : i32
    return %arg0, %c0_i32 : i32, i32
  }
}

</mosaic_0001>

<bundles_post_ra>
// kernel: forward.1
= control target key start
LH: loop header
LB: loop body
LE: loop exit
PB: predicated region body
PF: predicated region fallthrough
CT: control target
= control target key end

     0   :  { %12 = vsyncpa [#allocation3], 0  ;;  %s791_s0 = inlined_call_operand.vmem [shape: bf16[8,256], index: 0, kind: input, shape index: {}]   ;;  %s792_s1 = inlined_call_operand.vmem [shape: bf16[8,128], index: 1, kind: input, shape index: {}]   ;;  %s793_s2 = inlined_call_operand.hbm [shape: bf16[256,128], index: 2, kind: input, shape index: {}]   ;;  %s794_s3 = inlined_call_operand.hbm [shape: bf16[256,128], index: 3, kind: input, shape index: {}]   ;;  %s795_s4 = inlined_call_operand.vmem [shape: f32[8,128], index: 4, kind: input, shape index: {}]   ;;  %s796_s5 = inlined_call_operand.vmem [shape: f32[8,128], index: 5, kind: output, shape index: {0}]   ;;  %s797_s6 = inlined_call_operand.vmem [shape: s32[8,128], index: 6, kind: output, shape index: {1}]  }
   0x1   :  { %13 = vsyncpa [#allocation5], 0  ;;  %s690_s21 = smov [#allocation2]   ;;  %s642_s25 = scalar_lea.hbm %s793_s2, 2048 }
   0x2   :  { %s23_s22 = sshll.u32 %s690_s21, 4  ;;  %p643_p0 = scmp.ne.s32.totalorder %s793_s2, %s642_s25  ;;  %s24_s22 = int_to_ptr.vmem [resolvable:$true] %s23_s22 }
   0x3   :  { %p646_p1 = scmp.lt.u32.totalorder %s642_s25, %s793_s2 }
   0x5   :  { %p648_p2 = pnand %p646_p1, %p643_p0 }
   0x7   :  { %651 = shalt.err (!%p648_p2)
}
   0x8   :  { %s652_s30 = scalar_lea.vmem %s24_s22, 2048  ;;  %p657_p4 = scmp.lt.s32.totalorder %s24_s22, %s24_s22 }
   0x9   :  { %p653_p3 = scmp.ne.s32.totalorder %s24_s22, %s652_s30  ;;  %p658_p5 = scmp.lt.s32.totalorder %s652_s30, %s652_s30 }
   0xb   :  { %p659_p6 = por %p658_p5, %p657_p4 }
   0xd   :  { %p660_p7 = pnand %p659_p6, %p653_p3 }
   0xf   :  { %663 = shalt.err (!%p660_p7)
}
  0x10   :  { %s691_s7 = smov 64   ;;  %s692_s8 = smov 4  }
  0x11   :  { %29 = dma.hbm_to_vmem [thread:$0]  %s793_s2, 2048, %s24_s22, [#allocation3], %s691_s7, %s691_s7, %s692_s8  }
  0x12   :  { %s693_s11 = smov [#allocation4]   ;;  %s664_s15 = scalar_lea.hbm %s794_s3, 2048 }
  0x13   :  { %s35_s12 = sshll.u32 %s693_s11, 4  ;;  %p665_p8 = scmp.ne.s32.totalorder %s794_s3, %s664_s15  ;;  %s36_s12 = int_to_ptr.vmem [resolvable:$true] %s35_s12 }
  0x14   :  { %p668_p9 = scmp.lt.u32.totalorder %s664_s15, %s794_s3 }
  0x16   :  { %p670_p10 = pnand %p668_p9, %p665_p8 }
  0x18   :  { %673 = shalt.err (!%p670_p10)
}
  0x19   :  { %s674_s20 = scalar_lea.vmem %s36_s12, 2048  ;;  %p679_p12 = scmp.lt.s32.totalorder %s36_s12, %s36_s12 }
  0x1a   :  { %p675_p11 = scmp.ne.s32.totalorder %s36_s12, %s674_s20  ;;  %p680_p13 = scmp.lt.s32.totalorder %s674_s20, %s674_s20 }
  0x1c   :  { %p681_p0 = por %p680_p13, %p679_p12 }
  0x1e   :  { %p682_p1 = pnand %p681_p0, %p675_p11 }
  0x20   :  { %685 = shalt.err (!%p682_p1)
}
  0x21   :  { %41 = dma.hbm_to_vmem [thread:$0]  %s794_s3, 2048, %s36_s12, [#allocation5], %s691_s7, %s691_s7, %s692_s8  }
  0x22   :  { %686 = dma.done.wait [#allocation3], 2048  }
  0x23   :  { %687 = vsyncadd [#allocation3], 4294965248 }
  0x24   :  { %688 = dma.done.wait [#allocation5], 2048  }
  0x25   :  { %689 = vsyncadd [#allocation5], 4294965248  ;;  %v694_v0 = vmov 0.0   ;;  %v606_v1 = vld [vmem:[#allocation2 + $0x40] sm:$0xff]   ;;  %v608_v3 = vld [vmem:[#allocation2 + $0x48] sm:$0xff]   ;;  %vm695_vm0 = vmmov 0   ;;  %v450_v50 = vlaneseq }
  0x26   :  { %560 = vmatprep.subr.bf16.mxu1 %v694_v0  ;;  %v607_v2 = vld [vmem:[#allocation2] sm:$0xff]   ;;  %520 = vmatprep.subr.bf16.mxu0 %v606_v1  ;;  %v609_v4 = vld [vmem:[#allocation2 + $0x8] sm:$0xff]   ;;  %v610_v5 = vld [vmem:[#allocation2 + $0x50] sm:$0xff]  }
  0x27   :  { %521 = vmatpush3.bf16.msra.mxu0 %v607_v2  ;;  %v611_v6 = vld [vmem:[#allocation2 + $0x10] sm:$0xff]   ;;  %v612_v7 = vld [vmem:[#allocation2 + $0x58] sm:$0xff]   ;;  %v614_v9 = vld [vmem:[#allocation2 + $0x60] sm:$0xff]   ;;  %576 = vmatprep.mubr.msk.bf16.mxu1 %vm695_vm0, %v694_v0  ;;  %v451_v51 = vand.u32 127, %v450_v50 }
  0x28   :  { %522 = vmatprep.subr.bf16.mxu0 %v608_v3  ;;  %v613_v8 = vld [vmem:[#allocation2 + $0x18] sm:$0xff]   ;;  %v615_v10 = vld [vmem:[#allocation2 + $0x20] sm:$0xff]   ;;  %v616_v11 = vld [vmem:[#allocation2 + $0x68] sm:$0xff]  }
  0x29   :  { %v51_v12 = vld [vmem:[%s791_s0] sm:$0xff]  ;;  %v617_v15 = vld [vmem:[#allocation2 + $0x28] sm:$0xff]   ;;  %v618_v16 = vld [vmem:[#allocation2 + $0x70] sm:$0xff]   ;;  %vm452_vm1 = vcmp.lt.s32.totalorder %v451_v51, 10 }
  0x2a   :  { %v486_v13 = vcombine.high %v51_v12, %v51_v12  ;;  %v624_v14 = vld [vmem:[#allocation4 + $0x40] sm:$0xff]   ;;  %v626_v17 = vld [vmem:[#allocation4 + $0x48] sm:$0xff]   ;;  %v619_v18 = vld [vmem:[#allocation2 + $0x30] sm:$0xff]   ;;  %v485_v23 = vcombine.low %v51_v12, %v51_v12 }
  0x2b   :  { %523 = vmatpush3.bf16.msra.mxu0 %v609_v4  ;;  %561 = vmatpush3.bf16.msra.mxu1 %v624_v14  ;;  %v620_v19 = vld [vmem:[#allocation2 + $0x78] sm:$0xff]   ;;  %v628_v20 = vld [vmem:[#allocation4 + $0x50] sm:$0xff]   ;;  %v625_v24 = vld [vmem:[#allocation4] sm:$0xff]  }
  0x2c   :  { %524 = vmatprep.subr.bf16.mxu0 %v610_v5  ;;  %224 = vmatprep.mubr.bf16.mxu0 %v486_v13  ;;  %v621_v21 = vld [vmem:[#allocation2 + $0x38] sm:$0xff]   ;;  %v627_v25 = vld [vmem:[#allocation4 + $0x8] sm:$0xff]   ;;  %v629_v26 = vld [vmem:[#allocation4 + $0x10] sm:$0xff]  }
  0x2d   :  { %562 = vmatprep.subr.bf16.mxu1 %v694_v0  ;;  %v630_v22 = vld [vmem:[#allocation4 + $0x58] sm:$0xff]   ;;  %v632_v28 = vld [vmem:[#allocation4 + $0x60] sm:$0xff]   ;;  %v634_v30 = vld [vmem:[#allocation4 + $0x68] sm:$0xff]  }
  0x2e   :  { %v631_v27 = vld [vmem:[#allocation4 + $0x18] sm:$0xff]   ;;  %v633_v29 = vld [vmem:[#allocation4 + $0x20] sm:$0xff]   ;;  %v635_v31 = vld [vmem:[#allocation4 + $0x28] sm:$0xff]  }
  0x2f   :  { %525 = vmatpush3.bf16.msra.mxu0 %v611_v6  ;;  %563 = vmatpush3.bf16.msra.mxu1 %v626_v17  ;;  %v636_v32 = vld [vmem:[#allocation4 + $0x70] sm:$0xff]   ;;  %v638_v34 = vld [vmem:[#allocation4 + $0x78] sm:$0xff]   ;;  %v250_v36 = vld [vmem:[%s792_s1] sm:$0xf] }
  0x30   :  { %526 = vmatprep.subr.bf16.mxu0 %v612_v7  ;;  %564 = vmatprep.subr.bf16.mxu1 %v694_v0  ;;  %v637_v33 = vld [vmem:[#allocation4 + $0x30] sm:$0xff]   ;;  %v639_v35 = vld [vmem:[#allocation4 + $0x38] sm:$0xff]   ;;  %v484_v38 = vld [vmem:[%s795_s4] ss:$0 sm:$0xff] }
  0x31   :  { %v519_v53 = vld [vmem:[%s795_s4 + $0x1] ss:$0 sm:$0xff] }
  0x33   :  { %527 = vmatpush3.bf16.msra.mxu0 %v613_v8  ;;  %565 = vmatpush3.bf16.msra.mxu1 %v628_v20 }
  0x34   :  { %528 = vmatprep.subr.bf16.mxu0 %v614_v9  ;;  %566 = vmatprep.subr.bf16.mxu1 %v694_v0 }
  0x37   :  { %529 = vmatpush3.bf16.msra.mxu0 %v615_v10  ;;  %567 = vmatpush3.bf16.msra.mxu1 %v630_v22 }
  0x38   :  { %530 = vmatprep.subr.bf16.mxu0 %v616_v11  ;;  %568 = vmatprep.subr.bf16.mxu1 %v694_v0 }
  0x3b   :  { %531 = vmatpush3.bf16.msra.mxu0 %v617_v15  ;;  %569 = vmatpush3.bf16.msra.mxu1 %v632_v28 }
  0x3c   :  { %532 = vmatprep.subr.bf16.mxu0 %v618_v16  ;;  %570 = vmatprep.subr.bf16.mxu1 %v694_v0 }
  0x3f   :  { %533 = vmatpush3.bf16.msra.mxu0 %v619_v18  ;;  %571 = vmatpush3.bf16.msra.mxu1 %v634_v30 }
  0x40   :  { %534 = vmatprep.subr.bf16.mxu0 %v620_v19  ;;  %572 = vmatprep.subr.bf16.mxu1 %v694_v0 }
  0x43   :  { %535 = vmatpush3.bf16.msra.mxu0 %v621_v21  ;;  %573 = vmatpush3.bf16.msra.mxu1 %v636_v32 }
  0x44   :  { %580 = vmatprep.subr.bf16.mxu0 %v694_v0  ;;  %574 = vmatprep.subr.bf16.mxu1 %v694_v0 }
  0x46   :  { %225 = vmatmul.mubr.bf16.vlgmr.msra.gmra.mrb[0].mxu0 %v485_v23 }
  0x47   :  { %581 = vmatpush3.bf16.msra.mxu0 %v625_v24  ;;  %575 = vmatpush3.bf16.msra.mxu1 %v638_v34 }
  0x48   :  { %582 = vmatprep.subr.bf16.mxu0 %v694_v0  ;;  %596 = vmatprep.mubr.msk.bf16.mxu0 %vm695_vm0, %v694_v0 }
  0x4a   :  { %577 = vmatmul.mubr.bf16.vlgmr.msra.gmra.mrb[0].mxu1 %v250_v36 }
  0x4b   :  { %583 = vmatpush3.bf16.msra.mxu0 %v627_v25 }
  0x4c   :  { %584 = vmatprep.subr.bf16.mxu0 %v694_v0 }
  0x4f   :  { %585 = vmatpush3.bf16.msra.mxu0 %v629_v26 }
  0x50   :  { %586 = vmatprep.subr.bf16.mxu0 %v694_v0 }
  0x53   :  { %587 = vmatpush3.bf16.msra.mxu0 %v631_v27 }
  0x54   :  { %588 = vmatprep.subr.bf16.mxu0 %v694_v0 }
  0x57   :  { %589 = vmatpush3.bf16.msra.mxu0 %v633_v29 }
  0x58   :  { %590 = vmatprep.subr.bf16.mxu0 %v694_v0 }
  0x5b   :  { %591 = vmatpush3.bf16.msra.mxu0 %v635_v31 }
  0x5c   :  { %592 = vmatprep.subr.bf16.mxu0 %v694_v0 }
  0x5f   :  { %593 = vmatpush3.bf16.msra.mxu0 %v637_v33 }
  0x60   :  { %594 = vmatprep.subr.bf16.mxu0 %v694_v0 }
  0x63   :  { %595 = vmatpush3.bf16.msra.mxu0 %v639_v35 }
 0x119   :  { %v536_v37 = vpop.f32.mrb[0].mxu0 }
 0x11a   :  { %v537_v39 = vpop.f32.mrb[1].mxu0 }
 0x11b   :  { %v538_v40 = vadd.f32 %v537_v39, %v536_v37  ;;  %v539_v41 = vpop.f32.mrb[2].mxu0 }
 0x11c   :  { %v540_v42 = vpop.f32.mrb[3].mxu0 }
 0x11d   :  { %v227_v43 = vadd.f32 %v538_v40, %v484_v38  ;;  %v349_v46 = vpop.f32.mrb[0].mxu1 }
 0x11e   :  { %v578_v47 = vpop.f32.mrb[1].mxu1 }
 0x11f   :  { %640 = vtanh.f32 %v227_v43  ;;  %v352_v48 = vpop.f32.mrb[2].mxu1 }
 0x120   :  { %v579_v49 = vpop.f32.mrb[3].mxu1 }
 0x129   :  { %v641_v44 = vpop.eup %640 }
 0x12a   :  { %v233_v45 = vpack.c.bf16 %v641_v44, %v641_v44 }
 0x12c   :  { %597 = vmatmul.mubr.bf16.vlgmr.msra.gmra.mrb[4].mxu0 %v233_v45 }
 0x1ff   :  { %v437_v52 = vpop.f32.mrb[4].mxu0 }
 0x200   :  { %v438_v54 = vadd.f32 %v437_v52, %v349_v46  ;;  %v598_v55 = vpop.f32.mrb[5].mxu0 }
 0x201   :  { %v440_v56 = vpop.f32.mrb[6].mxu0 }
 0x202   :  { %v599_v57 = vpop.f32.mrb[7].mxu0  ;;  %v448_v58 = vadd.f32 %v519_v53, %v438_v54 }
 0x204   :  { %v453_v59 = vsel %vm452_vm1, %v448_v58, -3.4e+38  ;;  %449 = vst [vmem:[%s796_s5] sm:$0xff] %v448_v58 }
 0x205   :  { %454 = vmax.xlane.f32.xlu0 %v453_v59 }
 0x292   :  { %v455_v60 = vpop.xlane.xlu0 %454 }
 0x293   :  { %vm456_vm2 = vcmp.eq.f32.partialorder %v453_v59, %v455_v60 }
 0x294   :  { %vm457_vm3 = vmand %vm456_vm2, %vm452_vm1 }
 0x295   :  { %v458_v61 = vsel %vm457_vm3, %v451_v51, 128 }
 0x296   :  { %v460_v62 = vshra.s32 %v458_v61, 16  ;;  %v459_v0 = vand.u32 65535, %v458_v61 }
 0x298   :  { %v462_v63 = vcvt.s32.f32 %v460_v62  ;;  %v461_v2 = vcvt.s32.f32 %v459_v0 }
 0x29a   :  { %463 = vmin.xlane.f32.xlu0 %v462_v63 }
 0x327   :  { %v464_v1 = vpop.xlane.xlu0 %463 }
 0x328   :  { %vm465_vm4 = vcmp.eq.f32.partialorder %v462_v63, %v464_v1  ;;  %v470_v4 = vcvt.f32.s32 %v464_v1 }
 0x329   :  { %v466_v3 = vsel %vm465_vm4, %v461_v2, inf }
 0x32a   :  { %467 = vmin.xlane.f32.xlu1 %v466_v3  ;;  %v471_v6 = vshll.u32 %v470_v4, 16 }
 0x3b7   :  { %v468_v5 = vpop.xlane.xlu1 %467 }
 0x3b8   :  { %v469_v7 = vcvt.f32.s32 %v468_v5 }
 0x3ba   :  { %v472_v8 = vadd.s32 %v471_v6, %v469_v7 }
 0x3bc   :  { %473 = vst [vmem:[%s797_s6] sm:$0xff] %v472_v8 }
 0x3bd   :  { %482 = vsyncpa [#allocation3], 1 }
 0x3be   :  { %483 = vsyncpa [#allocation5], 1 }

</bundles_post_ra>
